<compile_context>
chip_gen: v7x
topology: tpu7x:2x2x1
jax: 0.10.0
libtpu: 0.0.40
codegen_flags: <defaults>
</compile_context>

<pallas_src>
import jax
import jax.numpy as jnp
from jax.experimental import pallas as pl
from jax.experimental.pallas import tpu as pltpu


def _round_up(x, m):
    return (x + m - 1) // m * m


def gru_seq_kernel(x_ref, h0_ref, wzr_ref, bzr_ref, wh_ref, bh_ref, h_ref):
    """One grid step == one GRU time step.

    x_ref   : (Bp, Hp)      current time-step input (streamed per grid step)
    h0_ref  : (Bp, Hp)      initial hidden state (read only at t == 0)
    wzr_ref : (Hp, 2*Hp)    [W_z.T | W_r.T] fused, pre-transposed, VMEM-resident
    bzr_ref : (1, 2*Hp)     [b_z | b_r]
    wh_ref  : (Hp, Hp)      W_h.T, VMEM-resident
    bh_ref  : (1, Hp)       b_h
    h_ref   : (Bp, Hp)      output block, reused as the running hidden state
                            (same block index every step -> stays in VMEM)
    """
    t = pl.program_id(0)

    @pl.when(t == 0)
    def _():
        h_ref[...] = h0_ref[...]

    Hp = h_ref.shape[-1]
    x = x_ref[...].astype(jnp.float32)
    h = h_ref[...].astype(jnp.float32)

    combined = x + h

    # Fused z|r gates: one (Bp, 2*Hp) MXU matmul instead of two (Bp, Hp) ones.
    zr = jax.nn.sigmoid(
        jnp.dot(combined, wzr_ref[...], preferred_element_type=jnp.float32)
        + bzr_ref[...]
    )
    z = zr[:, :Hp]
    r = zr[:, Hp:]

    # Candidate hidden state.
    h_cand = jnp.tanh(
        jnp.dot(x + r * h, wh_ref[...], preferred_element_type=jnp.float32)
        + bh_ref[...]
    )

    # (1 - z) * h + z * h_cand  ==  h + z * (h_cand - h)
    h_ref[...] = (h + z * (h_cand - h)).astype(h_ref.dtype)
    # TODO(synk): nn.Dropout is identity in eval mode; training-time dropout omitted.


def _prep_params(params, H, Hp):
    """Transpose once, fuse z|r, zero-pad to (Hp, ...) lane-dense tiles."""
    wz, bz = params["W_z"]
    wr, br = params["W_r"]
    wh, bh = params["W_h"]

    def pad_wt(w):  # PyTorch nn.Linear weight (H, H) -> padded W.T (Hp, Hp)
        return jnp.pad(w.T, ((0, Hp - H), (0, Hp - H)))

    def pad_b(b):   # (H,) -> (1, Hp)
        return jnp.pad(b.reshape(1, H), ((0, 0), (0, Hp - H)))

    wzr_t = jnp.concatenate([pad_wt(wz), pad_wt(wr)], axis=1)   # (Hp, 2*Hp)
    bzr = jnp.concatenate([pad_b(bz), pad_b(br)], axis=1)       # (1, 2*Hp)
    wh_t = pad_wt(wh)                                           # (Hp, Hp)
    bh_p = pad_b(bh)                                            # (1, Hp)
    return wzr_t, bzr, wh_t, bh_p


def basic_gru_sequence(xs, h0, params):
    """Apply the BasicGRU cell over a sequence, entirely inside one kernel.

    xs : (T, B, H) inputs, h0 : (B, H).  Returns final hidden state (B, H).
    """
    T, B, H = xs.shape
    Bp = _round_up(max(B, 8), 8)        # sublane-dense batch
    Hp = _round_up(max(H, 128), 128)    # lane-dense hidden

    xs_p = jnp.pad(xs, ((0, 0), (0, Bp - B), (0, Hp - H)))
    h0_p = jnp.pad(h0, ((0, Bp - B), (0, Hp - H)))
    wzr_t, bzr, wh_t, bh_p = _prep_params(params, H, Hp)

    # Constant block index across all time steps -> stays resident in VMEM.
    fixed = lambda shape: pl.BlockSpec(shape, lambda t: tuple(0 for _ in shape))

    out = pl.pallas_call(
        gru_seq_kernel,
        out_shape=jax.ShapeDtypeStruct((Bp, Hp), xs.dtype),
        grid_spec=pltpu.PrefetchScalarGridSpec(
            num_scalar_prefetch=0,
            grid=(T,),
            in_specs=[
                pl.BlockSpec((None, Bp, Hp), lambda t: (t, 0, 0)),  # x_t (streamed)
                fixed((Bp, Hp)),        # h0
                fixed((Hp, 2 * Hp)),    # [W_z.T | W_r.T]
                fixed((1, 2 * Hp)),     # [b_z | b_r]
                fixed((Hp, Hp)),        # W_h.T
                fixed((1, Hp)),         # b_h
            ],
            out_specs=fixed((Bp, Hp)),  # hidden-state accumulator
        ),
        compiler_params=pltpu.CompilerParams(
            dimension_semantics=("arbitrary",),  # sequential recurrence over T
        ),
    )(xs_p, h0_p, wzr_t, bzr, wh_t, bh_p)

    return out[:B, :H]


def basic_gru_forward(x, hidden, params):
    """Single BasicGRU step, matching the PyTorch module: (B,1,H),(B,1,H)->(B,1,H)."""
    B, one, H = x.shape
    assert one == 1
    h_new = basic_gru_sequence(x.reshape(1, B, H), hidden.reshape(B, H), params)
    return h_new.reshape(B, 1, H)


def init_params(key, hidden_size):
    """Deterministic nn.Linear-style init: U(-1/sqrt(H), 1/sqrt(H))."""
    bound = 1.0 / jnp.sqrt(jnp.float32(hidden_size))
    keys = jax.random.split(key, 6)

    def lin(kw, kb):
        w = jax.random.uniform(kw, (hidden_size, hidden_size),
                               minval=-bound, maxval=bound, dtype=jnp.float32)
        b = jax.random.uniform(kb, (hidden_size,),
                               minval=-bound, maxval=bound, dtype=jnp.float32)
        return w, b

    return {
        "W_z": lin(keys[0], keys[1]),
        "W_r": lin(keys[2], keys[3]),
        "W_h": lin(keys[4], keys[5]),
    }


def reference_step(x2, h2, params):
    """Pure-JAX reference for one step, 2-D (B, H) views (eval mode)."""
    wz, bz = params["W_z"]
    wr, br = params["W_r"]
    wh, bh = params["W_h"]
    combined = x2 + h2
    z = jax.nn.sigmoid(combined @ wz.T + bz)
    r = jax.nn.sigmoid(combined @ wr.T + br)
    h = jnp.tanh((x2 + r * h2) @ wh.T + bh)
    return (1.0 - z) * h2 + z * h


if __name__ == "__main__":
    key = jax.random.PRNGKey(0)
    k_par, k_x, k_h, k_seq = jax.random.split(key, 4)

    batch = 2
    hidden_size = 32
    seq_len = 8

    params = init_params(k_par, hidden_size)

    # --- single-step forward (matches the PyTorch module signature) ---
    x1 = jax.random.normal(k_x, (batch, 1, hidden_size), dtype=jnp.float32)
    h1 = jax.random.normal(k_h, (batch, 1, hidden_size), dtype=jnp.float32)
    out1 = jax.block_until_ready(basic_gru_forward(x1, h1, params))
    ref1 = reference_step(x1.reshape(batch, hidden_size),
                          h1.reshape(batch, hidden_size),
                          params).reshape(batch, 1, hidden_size)
    assert out1.shape == (batch, 1, hidden_size)
    assert jnp.allclose(out1, ref1, atol=1e-5, rtol=1e-5), "single-step mismatch"

    # --- recurrent use: whole sequence inside one kernel launch ---
    xs = jax.random.normal(k_seq, (seq_len, batch, hidden_size), dtype=jnp.float32)
    h0 = jax.random.normal(k_h, (batch, hidden_size), dtype=jnp.float32)
    out_seq = jax.block_until_ready(basic_gru_sequence(xs, h0, params))

    h_ref = h0
    for t in range(seq_len):
        h_ref = reference_step(xs[t], h_ref, params)
    assert out_seq.shape == (batch, hidden_size)
    assert jnp.allclose(out_seq, h_ref, atol=1e-5, rtol=1e-5), "sequence mismatch"

    print("KERNEL_OK")
</pallas_src>

<mosaic_0001>
module attributes {stable_mosaic.version = 11 : i64} {
  func.func @gru_seq_kernel(%arg0: i32, %arg1: memref<1x8x128xf32, #tpu.memory_space<vmem>>, %arg2: memref<8x128xf32, #tpu.memory_space<vmem>>, %arg3: memref<128x256xf32, #tpu.memory_space<vmem>>, %arg4: memref<1x256xf32, #tpu.memory_space<vmem>>, %arg5: memref<128x128xf32, #tpu.memory_space<vmem>>, %arg6: memref<1x128xf32, #tpu.memory_space<vmem>>, %arg7: memref<8x128xf32, #tpu.memory_space<vmem>>) attributes {dimension_semantics = [#tpu.dimension_semantics<arbitrary>], iteration_bounds = array<i64: 1>, scalar_prefetch = 0 : i64, scratch_operands = 0 : i64, tpu.core_type = #tpu.core_type<tc>, window_params = [{transform_indices = @transform_0, window_bounds = array<i64: 1, 8, 128>}, {pipeline_mode = #tpu.pipeline_mode<synchronous>, transform_indices = @transform_1, window_bounds = array<i64: 8, 128>}, {pipeline_mode = #tpu.pipeline_mode<synchronous>, transform_indices = @transform_2, window_bounds = array<i64: 128, 256>}, {pipeline_mode = #tpu.pipeline_mode<synchronous>, transform_indices = @transform_3, window_bounds = array<i64: 1, 256>}, {pipeline_mode = #tpu.pipeline_mode<synchronous>, transform_indices = @transform_4, window_bounds = array<i64: 128, 128>}, {pipeline_mode = #tpu.pipeline_mode<synchronous>, transform_indices = @transform_5, window_bounds = array<i64: 1, 128>}, {pipeline_mode = #tpu.pipeline_mode<synchronous>, transform_indices = @transform_6, window_bounds = array<i64: 8, 128>}]} {
    %c0_i32 = arith.constant 0 : i32
    %0 = arith.cmpi eq, %arg0, %c0_i32 : i32
    %1 = arith.extui %0 : i1 to i32
    %c0_i32_0 = arith.constant 0 : i32
    %2 = arith.cmpi ne, %1, %c0_i32_0 : i32
    scf.if %2 {
      %c0_17 = arith.constant 0 : index
      %c0_18 = arith.constant 0 : index
      %31 = vector.load %arg2[%c0_17, %c0_18] : memref<8x128xf32, #tpu.memory_space<vmem>>, vector<8x128xf32>
      %c0_19 = arith.constant 0 : index
      %c0_20 = arith.constant 0 : index
      %32 = vector.load %arg7[%c0_19, %c0_20] : memref<8x128xf32, #tpu.memory_space<vmem>>, vector<8x128xf32>
      tpu.vector_store %arg7[%c0_19, %c0_20], %31 {strides = array<i32>} : memref<8x128xf32, #tpu.memory_space<vmem>>, vector<8x128xf32>,
    } else {
    }
    %c0 = arith.constant 0 : index
    %c0_1 = arith.constant 0 : index
    %c0_2 = arith.constant 0 : index
    %3 = vector.load %arg1[%c0, %c0_1, %c0_2] : memref<1x8x128xf32, #tpu.memory_space<vmem>>, vector<1x8x128xf32>
    %4 = vector.shape_cast %3 : vector<1x8x128xf32> to vector<8x128xf32>
    %c0_3 = arith.constant 0 : index
    %c0_4 = arith.constant 0 : index
    %5 = vector.load %arg7[%c0_3, %c0_4] : memref<8x128xf32, #tpu.memory_space<vmem>>, vector<8x128xf32>
    %6 = arith.addf %4, %5 : vector<8x128xf32>
    %c0_5 = arith.constant 0 : index
    %c0_6 = arith.constant 0 : index
    %7 = vector.load %arg3[%c0_5, %c0_6] : memref<128x256xf32, #tpu.memory_space<vmem>>, vector<128x256xf32>
    %cst = arith.constant dense<0.000000e+00> : vector<8x256xf32>
    %8 = tpu.matmul %6, %7, %cst {dimension_numbers = #tpu.dot_dimension_numbers<[1], [0], [0], [1], [0, 0, 1, 1], [], []>} : vector<8x128xf32>, vector<128x256xf32>, vector<8x256xf32> -> vector<8x256xf32>
    %c0_7 = arith.constant 0 : index
    %c0_8 = arith.constant 0 : index
    %9 = vector.load %arg4[%c0_7, %c0_8] : memref<1x256xf32, #tpu.memory_space<vmem>>, vector<1x256xf32>
    %10 = vector.broadcast %9 : vector<1x256xf32> to vector<8x256xf32>
    %11 = arith.addf %8, %10 : vector<8x256xf32>
    %12 = arith.negf %11 : vector<8x256xf32>
    %13 = math.exp %12 : vector<8x256xf32>
    %cst_9 = arith.constant 1.000000e+00 : f32
    %14 = vector.broadcast %cst_9 : f32 to vector<8x256xf32>
    %15 = arith.addf %14, %13 : vector<8x256xf32>
    %16 = arith.divf %14, %15 : vector<8x256xf32>
    %17 = vector.extract_strided_slice %16 {offsets = [0, 0], sizes = [8, 128], strides = [1, 1]} : vector<8x256xf32> to vector<8x128xf32>
    %18 = vector.extract_strided_slice %16 {offsets = [0, 128], sizes = [8, 128], strides = [1, 1]} : vector<8x256xf32> to vector<8x128xf32>
    %19 = arith.mulf %18, %5 : vector<8x128xf32>
    %20 = arith.addf %4, %19 : vector<8x128xf32>
    %c0_10 = arith.constant 0 : index
    %c0_11 = arith.constant 0 : index
    %21 = vector.load %arg5[%c0_10, %c0_11] : memref<128x128xf32, #tpu.memory_space<vmem>>, vector<128x128xf32>
    %cst_12 = arith.constant dense<0.000000e+00> : vector<8x128xf32>
    %22 = tpu.matmul %20, %21, %cst_12 {dimension_numbers = #tpu.dot_dimension_numbers<[1], [0], [0], [1], [0, 0, 1, 1], [], []>} : vector<8x128xf32>, vector<128x128xf32>, vector<8x128xf32> -> vector<8x128xf32>
    %c0_13 = arith.constant 0 : index
    %c0_14 = arith.constant 0 : index
    %23 = vector.load %arg6[%c0_13, %c0_14] : memref<1x128xf32, #tpu.memory_space<vmem>>, vector<1x128xf32>
    %24 = vector.broadcast %23 : vector<1x128xf32> to vector<8x128xf32>
    %25 = arith.addf %22, %24 : vector<8x128xf32>
    %26 = math.tanh %25 : vector<8x128xf32>
    %27 = arith.subf %26, %5 : vector<8x128xf32>
    %28 = arith.mulf %17, %27 : vector<8x128xf32>
    %29 = arith.addf %5, %28 : vector<8x128xf32>
    %c0_15 = arith.constant 0 : index
    %c0_16 = arith.constant 0 : index
    %30 = vector.load %arg7[%c0_15, %c0_16] : memref<8x128xf32, #tpu.memory_space<vmem>>, vector<8x128xf32>
    tpu.vector_store %arg7[%c0_15, %c0_16], %29 {strides = array<i32>} : memref<8x128xf32, #tpu.memory_space<vmem>>, vector<8x128xf32>,
    return
  }
  func.func @transform_0(%arg0: i32) -> (i32, i32, i32) {
    %c0_i32 = arith.constant 0 : i32
    %c0_i32_0 = arith.constant 0 : i32
    %c0_i32_1 = arith.constant 0 : i32
    return %arg0, %c0_i32, %c0_i32_0 : i32, i32, i32
  }
  func.func @transform_1(%arg0: i32) -> (i32, i32) {
    %c0_i32 = arith.constant 0 : i32
    %c0_i32_0 = arith.constant 0 : i32
    %c0_i32_1 = arith.constant 0 : i32
    return %c0_i32, %c0_i32_0 : i32, i32
  }
  func.func @transform_2(%arg0: i32) -> (i32, i32) {
    %c0_i32 = arith.constant 0 : i32
    %c0_i32_0 = arith.constant 0 : i32
    %c0_i32_1 = arith.constant 0 : i32
    return %c0_i32, %c0_i32_0 : i32, i32
  }
  func.func @transform_3(%arg0: i32) -> (i32, i32) {
    %c0_i32 = arith.constant 0 : i32
    %c0_i32_0 = arith.constant 0 : i32
    %c0_i32_1 = arith.constant 0 : i32
    return %c0_i32, %c0_i32_0 : i32, i32
  }
  func.func @transform_4(%arg0: i32) -> (i32, i32) {
    %c0_i32 = arith.constant 0 : i32
    %c0_i32_0 = arith.constant 0 : i32
    %c0_i32_1 = arith.constant 0 : i32
    return %c0_i32, %c0_i32_0 : i32, i32
  }
  func.func @transform_5(%arg0: i32) -> (i32, i32) {
    %c0_i32 = arith.constant 0 : i32
    %c0_i32_0 = arith.constant 0 : i32
    %c0_i32_1 = arith.constant 0 : i32
    return %c0_i32, %c0_i32_0 : i32, i32
  }
  func.func @transform_6(%arg0: i32) -> (i32, i32) {
    %c0_i32 = arith.constant 0 : i32
    %c0_i32_0 = arith.constant 0 : i32
    %c0_i32_1 = arith.constant 0 : i32
    return %c0_i32, %c0_i32_0 : i32, i32
  }
}

</mosaic_0001>

<bundles_post_ra>
// kernel: tpu_custom_call.1
= control target key start
LH: loop header
LB: loop body
LE: loop exit
PB: predicated region body
PF: predicated region fallthrough
CT: control target
= control target key end

     0   :  { %11 = vsyncpa [#allocation3], 0  ;;  %s704_s0 = inlined_call_operand.hbm [shape: f32[1,8,128], index: 0, kind: input, shape index: {}]   ;;  %s705_s1 = inlined_call_operand.hbm [shape: f32[8,128], index: 1, kind: input, shape index: {}]   ;;  %s706_s2 = inlined_call_operand.hbm [shape: f32[128,256], index: 2, kind: input, shape index: {}]   ;;  %s707_s3 = inlined_call_operand.vmem [shape: f32[1,256], index: 3, kind: input, shape index: {}]   ;;  %s708_s4 = inlined_call_operand.hbm [shape: f32[128,128], index: 4, kind: input, shape index: {}]   ;;  %s709_s5 = inlined_call_operand.vmem [shape: f32[1,128], index: 5, kind: input, shape index: {}]   ;;  %s710_s6 = inlined_call_operand.hbm [shape: f32[8,128], index: 6, kind: output, shape index: {}]  }
   0x1   :  { %12 = vsyncpa [#allocation6], 0 }
   0x2   :  { %13 = vsyncpa [#allocation9], 0 }
   0x3   :  { %14 = vsyncpa [#allocation4], 0  ;;  %s579_s21 = smov [#allocation5]   ;;  %s580_s23 = smov [#allocation2]  }
   0x4   :  { %s31_s22 = sshll.u32 %s579_s21, 4  ;;  %s21_s24 = sshll.u32 %s580_s23, 4  ;;  %s32_s22 = int_to_ptr.vmem [resolvable:$true] %s31_s22  ;;  %s22_s24 = int_to_ptr.vmem [resolvable:$true] %s21_s24 }
   0x5   :  { %s461_s27 = scalar_lea.hbm %s705_s1, 128 }
   0x6   :  { %p462_p0 = scmp.ne.s32.totalorder %s705_s1, %s461_s27  ;;  %p465_p1 = scmp.lt.u32.totalorder %s461_s27, %s705_s1 }
   0x8   :  { %p467_p2 = pnand %p465_p1, %p462_p0 }
   0xa   :  { %470 = shalt.err (!%p467_p2)
}
   0xb   :  { %s471_s8 = scalar_lea.vmem %s32_s22, 128  ;;  %p476_p4 = scmp.lt.s32.totalorder %s32_s22, %s32_s22 }
   0xc   :  { %p472_p3 = scmp.ne.s32.totalorder %s32_s22, %s471_s8  ;;  %p477_p5 = scmp.lt.s32.totalorder %s471_s8, %s471_s8 }
   0xe   :  { %p478_p6 = por %p477_p5, %p476_p4 }
  0x10   :  { %p479_p7 = pnand %p478_p6, %p472_p3 }
  0x12   :  { %482 = shalt.err (!%p479_p7)
}
  0x13   :  { %34 = dma.hbm_to_vmem [thread:$0]  %s705_s1, 128, %s32_s22, [#allocation6]  }
  0x14   :  { %s483_s13 = scalar_lea.hbm %s704_s0, 128 }
  0x15   :  { %p484_p8 = scmp.ne.s32.totalorder %s704_s0, %s483_s13  ;;  %p487_p9 = scmp.lt.u32.totalorder %s483_s13, %s704_s0 }
  0x17   :  { %p489_p10 = pnand %p487_p9, %p484_p8 }
  0x19   :  { %492 = shalt.err (!%p489_p10)
}
  0x1a   :  { %s493_s18 = scalar_lea.vmem %s22_s24, 128  ;;  %p498_p12 = scmp.lt.s32.totalorder %s22_s24, %s22_s24 }
  0x1b   :  { %p494_p11 = scmp.ne.s32.totalorder %s22_s24, %s493_s18  ;;  %p499_p13 = scmp.lt.s32.totalorder %s493_s18, %s493_s18 }
  0x1d   :  { %p500_p0 = por %p499_p13, %p498_p12 }
  0x1f   :  { %p501_p1 = pnand %p500_p0, %p494_p11 }
  0x21   :  { %504 = shalt.err (!%p501_p1)
}
  0x22   :  { %24 = dma.hbm_to_vmem [thread:$0]  %s704_s0, 128, %s22_s24, [#allocation3]  }
  0x23   :  { %s581_s20 = smov [#allocation7]   ;;  %s505_s25 = scalar_lea.hbm %s706_s2, 4096 }
  0x24   :  { %s40_s21 = sshll.u32 %s581_s20, 4  ;;  %p506_p2 = scmp.ne.s32.totalorder %s706_s2, %s505_s25  ;;  %s41_s21 = int_to_ptr.vmem [resolvable:$true] %s40_s21 }
  0x25   :  { %p509_p3 = scmp.lt.u32.totalorder %s505_s25, %s706_s2 }
  0x27   :  { %p511_p4 = pnand %p509_p3, %p506_p2 }
  0x29   :  { %514 = shalt.err (!%p511_p4)
}
  0x2a   :  { %s515_s30 = scalar_lea.vmem %s41_s21, 4096  ;;  %p520_p6 = scmp.lt.s32.totalorder %s41_s21, %s41_s21 }
  0x2b   :  { %p516_p5 = scmp.ne.s32.totalorder %s41_s21, %s515_s30  ;;  %p521_p7 = scmp.lt.s32.totalorder %s515_s30, %s515_s30 }
  0x2d   :  { %p522_p8 = por %p521_p7, %p520_p6 }
  0x2f   :  { %p523_p9 = pnand %p522_p8, %p516_p5 }
  0x31   :  { %526 = shalt.err (!%p523_p9)
}
  0x32   :  { %s582_s0 = smov 256   ;;  %s583_s24 = smov 16  }
  0x33   :  { %46 = dma.hbm_to_vmem [thread:$0]  %s706_s2, 4096, %s41_s21, [#allocation6], %s582_s0, %s582_s0, %s583_s24  }
  0x34   :  { %s584_s9 = smov [#allocation8]   ;;  %s527_s13 = scalar_lea.hbm %s708_s4, 2048 }
  0x35   :  { %s54_s10 = sshll.u32 %s584_s9, 4  ;;  %p528_p10 = scmp.ne.s32.totalorder %s708_s4, %s527_s13  ;;  %s55_s10 = int_to_ptr.vmem [resolvable:$true] %s54_s10 }
  0x36   :  { %p531_p11 = scmp.lt.u32.totalorder %s527_s13, %s708_s4 }
  0x38   :  { %p533_p12 = pnand %p531_p11, %p528_p10 }
  0x3a   :  { %536 = shalt.err (!%p533_p12)
}
  0x3b   :  { %s537_s18 = scalar_lea.vmem %s55_s10, 2048  ;;  %p542_p0 = scmp.lt.s32.totalorder %s55_s10, %s55_s10 }
  0x3c   :  { %p538_p13 = scmp.ne.s32.totalorder %s55_s10, %s537_s18  ;;  %p543_p1 = scmp.lt.s32.totalorder %s537_s18, %s537_s18 }
  0x3e   :  { %p544_p2 = por %p543_p1, %p542_p0 }
  0x40   :  { %p545_p3 = pnand %p544_p2, %p538_p13 }
  0x42   :  { %548 = shalt.err (!%p545_p3)
}
  0x43   :  { %s585_s2 = smov 128   ;;  %s586_s1 = smov 8  }
  0x44   :  { %60 = dma.hbm_to_vmem [thread:$0]  %s708_s4, 2048, %s55_s10, [#allocation9], %s585_s2, %s585_s2, %s586_s1  }
  0x45   :  { %571 = dma.done.wait [#allocation3], 128  }
  0x46   :  { %572 = vsyncadd [#allocation3], 4294967168 }
  0x47   :  { %573 = dma.done.wait [#allocation6], 4224  }
  0x48   :  { %574 = vsyncadd [#allocation6], 4294963072 }
  0x49   :  { %575 = dma.done.wait [#allocation9], 2048  }
  0x4a   :  { %576 = vsyncadd [#allocation9], 4294965248  ;;  %v587_v0 = vmov 0.0   ;;  %v85_v1 = vld [vmem:[#allocation7 + $0x8] sm:$0xff]  ;;  %v87_v2 = vld [vmem:[#allocation7 + $0x18] sm:$0xff]  ;;  %v588_v55 = vmov 0.0|0.0  }
  0x4b   :  { %192 = vmatprep.mubr.f32.mxu0 %v587_v0  ;;  %v84_v3 = vld [vmem:[#allocation7] sm:$0xff]  ;;  %v383_v4 = vpack.c.bf16 %v87_v2, %v85_v1  ;;  %v86_v5 = vld [vmem:[#allocation7 + $0x10] sm:$0xff]  ;;  %v89_v6 = vld [vmem:[#allocation7 + $0x28] sm:$0xff]  ;;  %415 = vmatprep.subr.bf16.mxu1 %v588_v55  ;;  %vm589_vm0 = vmmov 0   ;;  %s590_s23 = smov [#allocation10]  }
  0x4c   :  { %v91_v7 = vld [vmem:[#allocation7 + $0x38] sm:$0xff]  ;;  %v385_v8 = vpack.c.bf16 %v86_v5, %v84_v3  ;;  %v88_v10 = vld [vmem:[#allocation7 + $0x20] sm:$0xff]  ;;  %v90_v11 = vld [vmem:[#allocation7 + $0x30] sm:$0xff]  ;;  %380 = vmatprep.mubr.msk.f32.mxu1 %vm589_vm0, %v587_v0  ;;  %s317_s25 = sshll.u32 %s590_s23, 4  ;;  %s318_s25 = int_to_ptr.vmem [resolvable:$true] %s317_s25 }
  0x4d   :  { %v387_v9 = vpack.c.bf16 %v91_v7, %v89_v6  ;;  %v93_v12 = vld [vmem:[#allocation7 + $0x48] sm:$0xff]  ;;  %384 = vmatprep.subr.bf16.mxu0 %v383_v4  ;;  %v95_v13 = vld [vmem:[#allocation7 + $0x58] sm:$0xff]  ;;  %v389_v14 = vpack.c.bf16 %v90_v11, %v88_v10  ;;  %v92_v16 = vld [vmem:[#allocation7 + $0x40] sm:$0xff]  ;;  %s549_s26 = scalar_lea.vmem %s318_s25, 128  ;;  %p554_p5 = scmp.lt.s32.totalorder %s318_s25, %s318_s25 }
  0x4e   :  { %386 = vmatpush1.bf16.msra.mxu0 %v385_v8  ;;  %v391_v15 = vpack.c.bf16 %v95_v13, %v93_v12  ;;  %v94_v17 = vld [vmem:[#allocation7 + $0x50] sm:$0xff]  ;;  %v97_v18 = vld [vmem:[#allocation7 + $0x68] sm:$0xff]  ;;  %v99_v19 = vld [vmem:[#allocation7 + $0x78] sm:$0xff]  ;;  %p550_p4 = scmp.ne.s32.totalorder %s318_s25, %s549_s26  ;;  %p555_p6 = scmp.lt.s32.totalorder %s549_s26, %s549_s26 }
  0x4f   :  { %388 = vmatprep.subr.bf16.mxu0 %v387_v9  ;;  %v393_v20 = vpack.c.bf16 %v94_v17, %v92_v16  ;;  %v395_v21 = vpack.c.bf16 %v99_v19, %v97_v18  ;;  %v96_v22 = vld [vmem:[#allocation7 + $0x60] sm:$0xff]  ;;  %v98_v23 = vld [vmem:[#allocation7 + $0x70] sm:$0xff]  ;;  %v101_v24 = vld [vmem:[#allocation7 + $0x88] sm:$0xff] }
  0x50   :  { %v103_v25 = vld [vmem:[#allocation7 + $0x98] sm:$0xff]  ;;  %v397_v26 = vpack.c.bf16 %v98_v23, %v96_v22  ;;  %v100_v28 = vld [vmem:[#allocation7 + $0x80] sm:$0xff]  ;;  %v102_v29 = vld [vmem:[#allocation7 + $0x90] sm:$0xff]  ;;  %p556_p7 = por %p555_p6, %p554_p5 }
  0x51   :  { %v399_v27 = vpack.c.bf16 %v103_v25, %v101_v24  ;;  %v105_v30 = vld [vmem:[#allocation7 + $0xa8] sm:$0xff]  ;;  %v107_v31 = vld [vmem:[#allocation7 + $0xb8] sm:$0xff]  ;;  %v401_v32 = vpack.c.bf16 %v102_v29, %v100_v28  ;;  %v104_v34 = vld [vmem:[#allocation7 + $0xa0] sm:$0xff] }
  0x52   :  { %390 = vmatpush1.bf16.msra.mxu0 %v389_v14  ;;  %v403_v33 = vpack.c.bf16 %v107_v31, %v105_v30  ;;  %v106_v35 = vld [vmem:[#allocation7 + $0xb0] sm:$0xff]  ;;  %v109_v36 = vld [vmem:[#allocation7 + $0xc8] sm:$0xff]  ;;  %v111_v37 = vld [vmem:[#allocation7 + $0xd8] sm:$0xff]  ;;  %v118_v14 = vlaneseq  ;;  %p557_p8 = pnand %p556_p7, %p550_p4 }
  0x53   :  { %392 = vmatprep.subr.bf16.mxu0 %v391_v15  ;;  %v405_v38 = vpack.c.bf16 %v106_v35, %v104_v34  ;;  %v407_v39 = vpack.c.bf16 %v111_v37, %v109_v36  ;;  %v108_v40 = vld [vmem:[#allocation7 + $0xc0] sm:$0xff]  ;;  %v110_v41 = vld [vmem:[#allocation7 + $0xd0] sm:$0xff]  ;;  %v113_v42 = vld [vmem:[#allocation7 + $0xe8] sm:$0xff] }
  0x54   :  { %v115_v43 = vld [vmem:[#allocation7 + $0xf8] sm:$0xff]  ;;  %v409_v44 = vpack.c.bf16 %v110_v41, %v108_v40  ;;  %v112_v46 = vld [vmem:[#allocation7 + $0xe0] sm:$0xff]  ;;  %v114_v47 = vld [vmem:[#allocation7 + $0xf0] sm:$0xff]  ;;  %v119_v15 = vshrl.u32 %v118_v14, 7 }
  0x55   :  { %v411_v45 = vpack.c.bf16 %v115_v43, %v113_v42  ;;  %v413_v48 = vpack.c.bf16 %v114_v47, %v112_v46  ;;  %v675_v49 = vld [vmem:[#allocation5] sm:$0xff]  ;;  %v677_v50 = vld [vmem:[#allocation2] sm:$0xff]  ;;  %v213_v52 = vld [vmem:[#allocation8] sm:$0xff] }
  0x56   :  { %394 = vmatpush1.bf16.msra.mxu0 %v393_v20  ;;  %v83_v51 = vadd.f32 %v677_v50, %v675_v49  ;;  %v214_v53 = vld [vmem:[#allocation8 + $0x8] sm:$0xff]  ;;  %v215_v56 = vld [vmem:[#allocation8 + $0x10] sm:$0xff]  ;;  %v216_v57 = vld [vmem:[#allocation8 + $0x18] sm:$0xff]  ;;  %v124_v16 = vsub.s32 1, %v119_v15 }
  0x57   :  { %396 = vmatprep.subr.bf16.mxu0 %v395_v21  ;;  %v416_v54 = vpack.c.bf16 %v214_v53, %v213_v52  ;;  %v419_v58 = vpack.c.bf16 %v216_v57, %v215_v56  ;;  %v217_v59 = vld [vmem:[#allocation8 + $0x20] sm:$0xff]  ;;  %v218_v60 = vld [vmem:[#allocation8 + $0x28] sm:$0xff]  ;;  %v219_v62 = vld [vmem:[#allocation8 + $0x30] sm:$0xff] }
  0x58   :  { %v422_v61 = vpack.c.bf16 %v218_v60, %v217_v59  ;;  %v220_v63 = vld [vmem:[#allocation8 + $0x38] sm:$0xff]  ;;  %v221_v2 = vld [vmem:[#allocation8 + $0x40] sm:$0xff]  ;;  %v222_v3 = vld [vmem:[#allocation8 + $0x48] sm:$0xff] }
  0x59   :  { %417 = vmatpush3.bf16.msra.mxu1 %v416_v54  ;;  %v425_v1 = vpack.c.bf16 %v220_v63, %v219_v62  ;;  %v428_v4 = vpack.c.bf16 %v222_v3, %v221_v2  ;;  %v223_v5 = vld [vmem:[#allocation8 + $0x50] sm:$0xff]  ;;  %v224_v6 = vld [vmem:[#allocation8 + $0x58] sm:$0xff]  ;;  %v225_v8 = vld [vmem:[#allocation8 + $0x60] sm:$0xff] }
  0x5a   :  { %398 = vmatpush1.bf16.msra.mxu0 %v397_v26  ;;  %418 = vmatprep.subr.bf16.mxu1 %v588_v55  ;;  %v431_v7 = vpack.c.bf16 %v224_v6, %v223_v5  ;;  %v226_v9 = vld [vmem:[#allocation8 + $0x68] sm:$0xff]  ;;  %v227_v11 = vld [vmem:[#allocation8 + $0x70] sm:$0xff]  ;;  %v228_v12 = vld [vmem:[#allocation8 + $0x78] sm:$0xff] }
  0x5b   :  { %400 = vmatprep.subr.bf16.mxu0 %v399_v27  ;;  %v434_v10 = vpack.c.bf16 %v226_v9, %v225_v8  ;;  %v437_v13 = vpack.c.bf16 %v228_v12, %v227_v11  ;;  %v116_v17 = vld [vmem:[%s707_s3] sm:$0x3]  ;;  %v120_v27 = vsub.s32 0, %v119_v15 }
  0x5c   :  { %v125_v18 = vrot.slane %v116_v17, %v124_v16 }
  0x5d   :  { %420 = vmatpush3.bf16.msra.mxu1 %v419_v58  ;;  %v121_v28 = vrot.slane %v116_v17, %v120_v27 }
  0x5e   :  { %402 = vmatpush1.bf16.msra.mxu0 %v401_v32  ;;  %421 = vmatprep.subr.bf16.mxu1 %v588_v55  ;;  %v330_v32 = vld [vmem:[%s709_s5] ss:$0 sm:$0xff] }
  0x5f   :  { %404 = vmatprep.subr.bf16.mxu0 %v403_v33 }
  0x61   :  { %423 = vmatpush3.bf16.msra.mxu1 %v422_v61 }
  0x62   :  { %406 = vmatpush1.bf16.msra.mxu0 %v405_v38  ;;  %424 = vmatprep.subr.bf16.mxu1 %v588_v55 }
  0x63   :  { %408 = vmatprep.subr.bf16.mxu0 %v407_v39 }
  0x65   :  { %426 = vmatpush3.bf16.msra.mxu1 %v425_v1 }
  0x66   :  { %410 = vmatpush1.bf16.msra.mxu0 %v409_v44  ;;  %427 = vmatprep.subr.bf16.mxu1 %v588_v55 }
  0x67   :  { %412 = vmatprep.subr.bf16.mxu0 %v411_v45 }
  0x69   :  { %429 = vmatpush3.bf16.msra.mxu1 %v428_v4 }
  0x6a   :  { %414 = vmatpush1.bf16.msra.mxu0 %v413_v48  ;;  %430 = vmatprep.subr.bf16.mxu1 %v588_v55 }
  0x6d   :  { %193 = vmatmul.mubr.f32.vlgmr.msra.gmra.mrb[0].mxu0 %v83_v51  ;;  %432 = vmatpush3.bf16.msra.mxu1 %v431_v7 }
  0x6e   :  { %433 = vmatprep.subr.bf16.mxu1 %v588_v55 }
  0x71   :  { %435 = vmatpush3.bf16.msra.mxu1 %v434_v10 }
  0x72   :  { %436 = vmatprep.subr.bf16.mxu1 %v588_v55 }
  0x75   :  { %438 = vmatpush3.bf16.msra.mxu1 %v437_v13 }
 0x140   :  { %v194_v19 = vpop.f32.mrb[0].mxu0 }
 0x141   :  { %v196_v20 = vpop.f32.mrb[1].mxu0  ;;  %v195_v29 = vadd.f32 %v194_v19, %v121_v28 }
 0x142   :  { %v197_v0 = vadd.f32 %v196_v20, %v125_v18 }
 0x143   :  { %v328_v30 = vmul.f32 -1.442695, %v195_v29 }
 0x144   :  { %v329_v21 = vmul.f32 -1.442695, %v197_v0 }
 0x146   :  { %451 = vpow2.f32 %v329_v21 }
 0x150   :  { %v452_v22 = vpop.eup %451 }
 0x151   :  { %v206_v23 = vadd.f32 1.0, %v452_v22 }
 0x153   :  { %453 = vrcp.f32 %v206_v23 }
 0x154   :  { %455 = vpow2.f32 %v328_v30 }
 0x15d   :  { %v454_v24 = vpop.eup %453 }
 0x15e   :  { %v211_v25 = vmul.f32 %v454_v24, %v675_v49  ;;  %v456_v31 = vpop.eup %455 }
 0x15f   :  { %v205_v34 = vadd.f32 1.0, %v456_v31 }
 0x160   :  { %v212_v26 = vadd.f32 %v211_v25, %v677_v50 }
 0x162   :  { %381 = vmatmul.mubr.f32.vlgmr.msra.gmra.mrb[0].mxu1 %v212_v26 }
 0x235   :  { %v302_v33 = vpop.f32.mrb[0].mxu1 }
 0x236   :  { %v303_v35 = vadd.f32 %v330_v32, %v302_v33  ;;  %v382_v36 = vpop.f32.mrb[1].mxu1 }
 0x238   :  { %457 = vtanh.f32 %v303_v35 }
 0x239   :  { %459 = vrcp.f32 %v205_v34 }
 0x242   :  { %v458_v37 = vpop.eup %457 }
 0x243   :  { %v307_v38 = vsub.f32 %v458_v37, %v675_v49  ;;  %v460_v39 = vpop.eup %459 }
 0x245   :  { %v308_v40 = vmul.f32 %v460_v39, %v307_v38 }
 0x247   :  { %v309_v41 = vadd.f32 %v308_v40, %v675_v49 }
 0x249   :  { %310 = vst [vmem:[#allocation10] sm:$0xff] %v309_v41 }
 0x24a   :  { %560 = shalt.err (!%p557_p8)
}
 0x24b   :  { %s561_s28 = scalar_lea.hbm %s710_s6, 128 }
 0x24c   :  { %p562_p9 = scmp.ne.s32.totalorder %s710_s6, %s561_s28  ;;  %p565_p10 = scmp.lt.u32.totalorder %s561_s28, %s710_s6 }
 0x24e   :  { %p567_p11 = pnand %p565_p10, %p562_p9 }
 0x250   :  { %570 = shalt.err (!%p567_p11)
}
 0x251   :  { %320 = dma.vmem_to_hbm [thread:$0]  %s318_s25, 128, %s710_s6, [#allocation4]  }
 0x252   :  { %577 = dma.done.wait [#allocation4], 128  }
 0x253   :  { %578 = vsyncadd [#allocation4], 4294967168 }
 0x254   :  { %324 = vsyncpa [#allocation3], 1 }
 0x255   :  { %325 = vsyncpa [#allocation6], 1 }
 0x256   :  { %326 = vsyncpa [#allocation9], 1 }
 0x257   :  { %327 = vsyncpa [#allocation4], 1 }

</bundles_post_ra>
